<compile_context>
chip_gen: v7x
topology: tpu7x:2x2x1
jax: 0.10.0
libtpu: 0.0.40
codegen_flags: <defaults>
</compile_context>

<pallas_src>
import functools

import jax
import jax.numpy as jnp
from jax.experimental import pallas as pl
from jax.experimental.pallas import tpu as pltpu


def _round_up(x, m):
    return ((x + m - 1) // m) * m


def _has_buffered():
    """Can this JAX single-buffer grid-invariant operands (halves their VMEM)?"""
    try:
        pl.BlockSpec((8, 128), lambda i: (0, 0), pipeline_mode=pl.Buffered(1))
        return True
    except Exception:      # pragma: no cover - older JAX without pipeline_mode
        return False


_HAS_BUFFERED = _has_buffered()


def _resident_spec(shape):
    """BlockSpec for grid-invariant operands (weights/biases): fetched once,
    single-buffered when supported (falls back to the default double-buffered
    spec; the VMEM accounting below tracks which one actually applies)."""
    idx = lambda *g: (0,) * len(shape)
    if _HAS_BUFFERED:
        return pl.BlockSpec(shape, idx, pipeline_mode=pl.Buffered(1))
    return pl.BlockSpec(shape, idx)


def _vmem_capacity_bytes():
    try:
        return int(pltpu.get_tpu_info().vmem_capacity_bytes)
    except Exception:      # pragma: no cover
        return 64 << 20    # conservative fallback: v7x per-TensorCore VMEM


# ----------------------------------------------------------------------------- kernels

def _mlp_kernel_resident(h_ref, w1_ref, b1_ref, w2_ref, b2_ref, o_ref):
    """Fused Linear -> ReLU -> Linear -> Softplus; both weights resident in VMEM."""
    # Cast in VMEM (free VPU op) instead of pre-casting in the wrapper: keeps the
    # HBM input stream at 1x even in bf16-matmul mode.
    h = h_ref[...].astype(w1_ref.dtype)
    # TODO(synk): expose a precision knob (lax.Precision.HIGHEST) if bit-exact f32
    # matmul is required; the TPU default runs reduced-precision MXU passes.
    a1 = jnp.dot(h, w1_ref[...], preferred_element_type=jnp.float32)
    a1 = jnp.maximum(a1 + b1_ref[...], 0.0)                    # ReLU in f32
    z = jnp.dot(a1.astype(w2_ref.dtype), w2_ref[...],
                preferred_element_type=jnp.float32)
    z = z + b2_ref[...]
    # Softplus (PyTorch default beta=1, threshold=20): x > 20 -> x else log1p(exp(x)).
    z_clip = jnp.minimum(z, 20.0)                              # avoid overflow in unused branch
    sp = jnp.where(z > 20.0, z, jnp.log1p(jnp.exp(z_clip)))
    o_ref[...] = sp.astype(o_ref.dtype)


def _mlp_kernel_ktiled(h_ref, w1_ref, b1_ref, w2_ref, b2_ref, o_ref, acc_ref):
    """Hidden-dimension-tiled variant: grid = (row tiles, hidden blocks).

    z = sum_j relu(h @ W1[:, jblk] + b1[jblk]) @ W2[jblk, :]  (exact split: ReLU is
    elementwise over the hidden axis), accumulated in an f32 VMEM scratch; bias2,
    softplus and the output store happen on the last hidden block only.
    """
    j = pl.program_id(1)

    @pl.when(j == 0)
    def _():
        acc_ref[...] = jnp.zeros_like(acc_ref)

    h = h_ref[...].astype(w1_ref.dtype)
    a1 = jnp.dot(h, w1_ref[...], preferred_element_type=jnp.float32)
    a1 = jnp.maximum(a1 + b1_ref[...], 0.0)
    acc_ref[...] += jnp.dot(a1.astype(w2_ref.dtype), w2_ref[...],
                            preferred_element_type=jnp.float32)

    @pl.when(j == pl.num_programs(1) - 1)
    def _():
        z = acc_ref[...] + b2_ref[...]
        z_clip = jnp.minimum(z, 20.0)
        sp = jnp.where(z > 20.0, z, jnp.log1p(jnp.exp(z_clip)))
        o_ref[...] = sp.astype(o_ref.dtype)


# ------------------------------------------------------------------------------ tiling

def _choose_tiling(n_rows, d, d_hidden, mm_isz, in_isz, out_isz, budget_bytes):
    """Pick (tile_m, tile_k).  tile_k == d_hidden -> resident-weight fast path;
    tile_k < d_hidden -> stream weight blocks over an 'arbitrary' hidden axis."""
    # >= 2 row-grid steps whenever N allows, so v7x's two TensorCores both get work
    # (and the pipeline has something to overlap).  Cap at 1024 (diminishing returns).
    cap_tm = max(8, min(1024, _round_up(-(-n_rows // 2), 8)))
    floor_tm = min(cap_tm, 256)          # pipeline-efficiency floor (~85% HBM roofline)

    def per_row(ktiled):
        b = 2 * d * in_isz + 2 * d * out_isz     # double-buffered h / out tiles
        b += 3 * d_hidden * 4                    # f32 temps (cast h, a1, z)
        if ktiled:
            b += d_hidden * 4                    # f32 accumulator scratch
        return b

    def fit_tm(weight_bytes, ktiled):
        if budget_bytes <= weight_bytes:
            return 0
        tm = (budget_bytes - weight_bytes) // per_row(ktiled)
        return int(min(cap_tm, (tm // 8) * 8))

    wf = 1 if _HAS_BUFFERED else 2               # weight buffering actually in effect

    # 1) Resident weights (single hidden block).
    tm = fit_tm(wf * (2 * d * d_hidden * mm_isz + (d_hidden + d) * 4), False)
    if tm >= floor_tm:
        return max(tm, 8), d_hidden

    # 2) Stream (d, tile_k)/(tile_k, d) weight blocks (double-buffered to overlap
    #    weight DMA with MXU work).  tile_k must divide d_hidden exactly so no
    #    garbage-padded hidden block ever enters the accumulation.
    best = (8, 128)
    for tk in range(d_hidden, 0, -128):
        if d_hidden % tk:
            continue
        tm = fit_tm(2 * (2 * d * tk * mm_isz + tk * 4) + wf * d * 4, True)
        if tm >= floor_tm:
            return max(tm, 8), tk
        if tm > best[0]:
            best = (max(tm, 8), tk)
    return best


# ------------------------------------------------------------------------------ params

def prepare_params(w1, b1, w2, b2, *, matmul_dtype=jnp.float32):
    """One-time parameter prep (do NOT call per forward step): transpose nn.Linear
    weights (out,in)->(in,out) and zero-pad ONLY the hidden dimension to a lane-dense
    multiple of 128.  The input/output D edges stay unpadded so the wrapper never
    pads or slices the activation tensor.  Use matmul_dtype=jnp.bfloat16 for ~2-4x
    MXU throughput and half the weight traffic (recommended on v5e)."""
    D = w1.shape[0]
    Dh = _round_up(D, 128)
    pad = Dh - D
    w1_t = jnp.pad(w1.T, ((0, 0), (0, pad))).astype(matmul_dtype)   # (D, Dh)
    w2_t = jnp.pad(w2.T, ((0, pad), (0, 0))).astype(matmul_dtype)   # (Dh, D)
    b1_p = jnp.pad(b1, (0, pad)).reshape(1, Dh).astype(jnp.float32)
    b2_p = b2.reshape(1, D).astype(jnp.float32)
    return w1_t, b1_p, w2_t, b2_p


def ea_posterior_sigma_forward(h, w1_t, b1_p, w2_t, b2_p, *,
                               tile_m=None, tile_k=None, out_dtype=None):
    """softplus(relu(h @ W1^T + b1) @ W2^T + b2).  h: (..., D).
    w1_t/b1_p/w2_t/b2_p: outputs of prepare_params.  out_dtype lets downstream
    consumers take e.g. a bf16 result (halves the HBM writeback stream)."""
    orig_shape = h.shape
    D = orig_shape[-1]
    Dh = w1_t.shape[1]
    assert w1_t.shape == (D, Dh) and w2_t.shape == (Dh, D)
    assert b1_p.shape == (1, Dh) and b2_p.shape == (1, D)

    out_dtype = h.dtype if out_dtype is None else out_dtype
    h2d = h.reshape(-1, D)               # row-major view; no pad / no HBM copy
    N = h2d.shape[0]

    mm_isz = jnp.dtype(w1_t.dtype).itemsize
    in_isz = jnp.dtype(h.dtype).itemsize
    out_isz = jnp.dtype(out_dtype).itemsize

    capacity = _vmem_capacity_bytes()                      # generation-aware
    budget = max(capacity - (24 << 20), 16 << 20)

    auto_tm, auto_tk = _choose_tiling(N, D, Dh, mm_isz, in_isz, out_isz, budget)
    tile_m = auto_tm if tile_m is None else tile_m
    tile_k = auto_tk if tile_k is None else tile_k
    tile_m = int(max(8, (int(tile_m) // 8) * 8))
    tile_m = min(tile_m, _round_up(N, 8))
    if N < 8:
        tile_m = N                                          # full-extent block (legal)
    tile_k = int(tile_k)
    assert tile_k % 128 == 0 and Dh % tile_k == 0
    num_k = Dh // tile_k

    # VMEM accounting consistent with the Buffered(1) fallback.
    wf = 1 if _HAS_BUFFERED else 2
    if num_k == 1:
        w_bytes = wf * (2 * D * Dh * mm_isz + (Dh + D) * 4)
    else:
        w_bytes = 2 * (2 * D * tile_k * mm_isz + tile_k * 4) + wf * D * 4
    io_bytes = 2 * tile_m * D * (in_isz + out_isz)
    tmp_bytes = (4 if num_k > 1 else 3) * tile_m * Dh * 4
    needed = w_bytes + io_bytes + tmp_bytes
    vmem_limit = int(min(max(needed + (8 << 20), 32 << 20), capacity - (8 << 20)))

    if num_k == 1:
        # Resident-weight fast path. Ragged last row tile: OOB reads are garbage but
        # rows are independent; OOB output rows are dropped by the masked store.
        grid = (pl.cdiv(N, tile_m),)
        in_specs = [
            pl.BlockSpec((tile_m, D), lambda i: (i, 0)),     # h rows (2x-buffered)
            _resident_spec((D, Dh)),                         # W1^T (resident)
            _resident_spec((1, Dh)),                         # b1
            _resident_spec((Dh, D)),                         # W2^T (resident)
            _resident_spec((1, D)),                          # b2
        ]
        out_specs = pl.BlockSpec((tile_m, D), lambda i: (i, 0))
        scratch = []
        kernel = _mlp_kernel_resident
        dims = ("parallel",)
    else:
        # Hidden-dim streaming path (large D / small VMEM, e.g. v7x).
        grid = (pl.cdiv(N, tile_m), num_k)
        in_specs = [
            pl.BlockSpec((tile_m, D), lambda i, j: (i, 0)),  # h (invariant over j)
            pl.BlockSpec((D, tile_k), lambda i, j: (0, j)),  # W1^T cols (streamed)
            pl.BlockSpec((1, tile_k), lambda i, j: (0, j)),  # b1 block
            pl.BlockSpec((tile_k, D), lambda i, j: (j, 0)),  # W2^T rows (streamed)
            _resident_spec((1, D)),                          # b2 (grid-invariant)
        ]
        out_specs = pl.BlockSpec((tile_m, D), lambda i, j: (i, 0))
        scratch = [pltpu.VMEM((tile_m, D), jnp.float32)]     # f32 accumulator
        kernel = _mlp_kernel_ktiled
        dims = ("parallel", "arbitrary")

    out = pl.pallas_call(
        kernel,
        out_shape=jax.ShapeDtypeStruct((N, D), out_dtype),
        grid_spec=pltpu.PrefetchScalarGridSpec(
            num_scalar_prefetch=0,
            grid=grid,
            in_specs=in_specs,
            out_specs=out_specs,
            scratch_shapes=scratch,
        ),
        compiler_params=pltpu.CompilerParams(
            dimension_semantics=dims,
            vmem_limit_bytes=vmem_limit,
        ),
    )(h2d, w1_t, b1_p, w2_t, b2_p)

    return out.reshape(orig_shape)


def init_params(key, embedding_dim):
    """Deterministic init matching nn.Linear shapes: W (out, in), b (out,)."""
    k1, k2, k3, k4 = jax.random.split(key, 4)
    bound = 1.0 / (embedding_dim ** 0.5)
    w1 = jax.random.uniform(k1, (embedding_dim, embedding_dim), jnp.float32, -bound, bound)
    b1 = jax.random.uniform(k2, (embedding_dim,), jnp.float32, -bound, bound)
    w2 = jax.random.uniform(k3, (embedding_dim, embedding_dim), jnp.float32, -bound, bound)
    b2 = jax.random.uniform(k4, (embedding_dim,), jnp.float32, -bound, bound)
    return w1, b1, w2, b2


def _reference(h, w1, b1, w2, b2):
    a1 = jnp.maximum(h @ w1.T + b1, 0.0)
    z = a1 @ w2.T + b2
    return jnp.where(z > 20.0, z, jnp.log1p(jnp.exp(jnp.minimum(z, 20.0))))


if __name__ == "__main__":
    key = jax.random.PRNGKey(0)
    batch, seq, embedding_dim = 2, 8, 32

    k_h, k_p = jax.random.split(key)
    h = jax.random.normal(k_h, (batch, seq, embedding_dim), dtype=jnp.float32)
    w1, b1, w2, b2 = init_params(k_p, embedding_dim)

    # One-time weight transpose + hidden-dim padding (hoisted out of the call path).
    w1_t, b1_p, w2_t, b2_p = prepare_params(w1, b1, w2, b2)

    fwd = jax.jit(ea_posterior_sigma_forward)
    out = jax.block_until_ready(fwd(h, w1_t, b1_p, w2_t, b2_p))

    ref = _reference(h, w1, b1, w2, b2)
    assert out.shape == h.shape
    assert out.dtype == h.dtype
    assert jnp.allclose(out, ref, atol=1e-5, rtol=1e-5)

    # Also exercise the hidden-dim (K-tiled, streamed-weights) path that large D on
    # v7x would select automatically, by forcing tile_k < Dh at a small shape.
    D2 = 256
    h2 = jax.random.normal(k_h, (batch, seq, D2), dtype=jnp.float32)
    p2 = init_params(k_p, D2)
    w1t2, b1p2, w2t2, b2p2 = prepare_params(*p2)
    fwd_kt = jax.jit(functools.partial(ea_posterior_sigma_forward, tile_k=128))
    out_kt = jax.block_until_ready(fwd_kt(h2, w1t2, b1p2, w2t2, b2p2))
    out_res = jax.block_until_ready(fwd(h2, w1t2, b1p2, w2t2, b2p2))
    ref2 = _reference(h2, *p2)
    assert jnp.allclose(out_kt, out_res, atol=1e-5, rtol=1e-5)   # same math, split hidden dim
    assert jnp.allclose(out_kt, ref2, atol=3e-2, rtol=3e-2)      # loose: MXU default precision

    print("KERNEL_OK")
</pallas_src>

<mosaic_0001>
module attributes {stable_mosaic.version = 11 : i64} {
  func.func @_mlp_kernel_resident(%arg0: i32, %arg1: memref<8x32xf32, #tpu.memory_space<vmem>>, %arg2: memref<32x128xf32, #tpu.memory_space<vmem>>, %arg3: memref<1x128xf32, #tpu.memory_space<vmem>>, %arg4: memref<128x32xf32, #tpu.memory_space<vmem>>, %arg5: memref<1x32xf32, #tpu.memory_space<vmem>>, %arg6: memref<8x32xf32, #tpu.memory_space<vmem>>) attributes {dimension_semantics = [#tpu.dimension_semantics<parallel>], iteration_bounds = array<i64: 2>, scalar_prefetch = 0 : i64, scratch_operands = 0 : i64, tpu.core_type = #tpu.core_type<tc>, window_params = [{transform_indices = @transform_0, window_bounds = array<i64: 8, 32>}, {pipeline_mode = #tpu.pipeline_mode<synchronous>, transform_indices = @transform_1, window_bounds = array<i64: 32, 128>}, {pipeline_mode = #tpu.pipeline_mode<synchronous>, transform_indices = @transform_2, window_bounds = array<i64: 1, 128>}, {pipeline_mode = #tpu.pipeline_mode<synchronous>, transform_indices = @transform_3, window_bounds = array<i64: 128, 32>}, {pipeline_mode = #tpu.pipeline_mode<synchronous>, transform_indices = @transform_4, window_bounds = array<i64: 1, 32>}, {transform_indices = @transform_5, window_bounds = array<i64: 8, 32>}]} {
    %c0 = arith.constant 0 : index
    %c0_0 = arith.constant 0 : index
    %0 = vector.load %arg1[%c0, %c0_0] : memref<8x32xf32, #tpu.memory_space<vmem>>, vector<8x32xf32>
    %c0_1 = arith.constant 0 : index
    %c0_2 = arith.constant 0 : index
    %1 = vector.load %arg2[%c0_1, %c0_2] : memref<32x128xf32, #tpu.memory_space<vmem>>, vector<32x128xf32>
    %cst = arith.constant dense<0.000000e+00> : vector<8x128xf32>
    %2 = tpu.matmul %0, %1, %cst {dimension_numbers = #tpu.dot_dimension_numbers<[1], [0], [0], [1], [0, 0, 1, 1], [], []>} : vector<8x32xf32>, vector<32x128xf32>, vector<8x128xf32> -> vector<8x128xf32>
    %c0_3 = arith.constant 0 : index
    %c0_4 = arith.constant 0 : index
    %3 = vector.load %arg3[%c0_3, %c0_4] : memref<1x128xf32, #tpu.memory_space<vmem>>, vector<1x128xf32>
    %4 = vector.broadcast %3 : vector<1x128xf32> to vector<8x128xf32>
    %5 = arith.addf %2, %4 : vector<8x128xf32>
    %cst_5 = arith.constant 0.000000e+00 : f32
    %6 = vector.broadcast %cst_5 : f32 to vector<8x128xf32>
    %7 = arith.maximumf %5, %6 : vector<8x128xf32>
    %c0_6 = arith.constant 0 : index
    %c0_7 = arith.constant 0 : index
    %8 = vector.load %arg4[%c0_6, %c0_7] : memref<128x32xf32, #tpu.memory_space<vmem>>, vector<128x32xf32>
    %cst_8 = arith.constant dense<0.000000e+00> : vector<8x32xf32>
    %9 = tpu.matmul %7, %8, %cst_8 {dimension_numbers = #tpu.dot_dimension_numbers<[1], [0], [0], [1], [0, 0, 1, 1], [], []>} : vector<8x128xf32>, vector<128x32xf32>, vector<8x32xf32> -> vector<8x32xf32>
    %c0_9 = arith.constant 0 : index
    %c0_10 = arith.constant 0 : index
    %10 = vector.load %arg5[%c0_9, %c0_10] : memref<1x32xf32, #tpu.memory_space<vmem>>, vector<1x32xf32>
    %11 = vector.broadcast %10 : vector<1x32xf32> to vector<8x32xf32>
    %12 = arith.addf %9, %11 : vector<8x32xf32>
    %cst_11 = arith.constant 2.000000e+01 : f32
    %13 = vector.broadcast %cst_11 : f32 to vector<8x32xf32>
    %14 = arith.minimumf %12, %13 : vector<8x32xf32>
    %cst_12 = arith.constant 2.000000e+01 : f32
    %15 = vector.broadcast %cst_12 : f32 to vector<8x32xf32>
    %16 = arith.cmpf ogt, %12, %15 : vector<8x32xf32>
    %17 = math.exp %14 : vector<8x32xf32>
    %18 = math.log1p %17 : vector<8x32xf32>
    %19 = arith.select %16, %12, %18 : vector<8x32xi1>, vector<8x32xf32>
    %c0_13 = arith.constant 0 : index
    %c0_14 = arith.constant 0 : index
    %20 = vector.load %arg6[%c0_13, %c0_14] : memref<8x32xf32, #tpu.memory_space<vmem>>, vector<8x32xf32>
    tpu.vector_store %arg6[%c0_13, %c0_14], %19 {strides = array<i32>} : memref<8x32xf32, #tpu.memory_space<vmem>>, vector<8x32xf32>,
    return
  }
  func.func @transform_0(%arg0: i32) -> (i32, i32) {
    %c0_i32 = arith.constant 0 : i32
    %c0_i32_0 = arith.constant 0 : i32
    return %arg0, %c0_i32 : i32, i32
  }
  func.func @transform_1(%arg0: i32) -> (i32, i32) {
    %c0_i32 = arith.constant 0 : i32
    %c0_i32_0 = arith.constant 0 : i32
    %c0_i32_1 = arith.constant 0 : i32
    return %c0_i32, %c0_i32_0 : i32, i32
  }
  func.func @transform_2(%arg0: i32) -> (i32, i32) {
    %c0_i32 = arith.constant 0 : i32
    %c0_i32_0 = arith.constant 0 : i32
    %c0_i32_1 = arith.constant 0 : i32
    return %c0_i32, %c0_i32_0 : i32, i32
  }
  func.func @transform_3(%arg0: i32) -> (i32, i32) {
    %c0_i32 = arith.constant 0 : i32
    %c0_i32_0 = arith.constant 0 : i32
    %c0_i32_1 = arith.constant 0 : i32
    return %c0_i32, %c0_i32_0 : i32, i32
  }
  func.func @transform_4(%arg0: i32) -> (i32, i32) {
    %c0_i32 = arith.constant 0 : i32
    %c0_i32_0 = arith.constant 0 : i32
    %c0_i32_1 = arith.constant 0 : i32
    return %c0_i32, %c0_i32_0 : i32, i32
  }
  func.func @transform_5(%arg0: i32) -> (i32, i32) {
    %c0_i32 = arith.constant 0 : i32
    %c0_i32_0 = arith.constant 0 : i32
    return %arg0, %c0_i32 : i32, i32
  }
}

</mosaic_0001>

<bundles_post_ra>
// kernel: ea_posterior_sigma_forward.1
= control target key start
LH: loop header
LB: loop body
LE: loop exit
PB: predicated region body
PF: predicated region fallthrough
CT: control target
= control target key end

     0   :  { %10 = vsyncpa [#allocation3], 0  ;;  %s911_s0 = inlined_call_operand.vmem [shape: f32[16,32], index: 0, kind: input, shape index: {}]   ;;  %s912_s1 = inlined_call_operand.vmem [shape: f32[32,128], index: 1, kind: input, shape index: {}]   ;;  %s913_s2 = inlined_call_operand.vmem [shape: f32[1,128], index: 2, kind: input, shape index: {}]   ;;  %s914_s3 = inlined_call_operand.vmem [shape: f32[128,32], index: 3, kind: input, shape index: {}]   ;;  %s915_s4 = inlined_call_operand.vmem [shape: f32[1,32], index: 4, kind: input, shape index: {}]   ;;  %s916_s5 = inlined_call_operand.hbm [shape: f32[16,32], index: 5, kind: output, shape index: {}]  }
   0x1   :  { %12 = vsyncpa [#allocation3 + $0x1], 0  ;;  %s743_s18 = smov 0   ;;  %s745_s19 = smov 0  }
   0x2   :  { %s747_s20 = smov 0   ;;  %s749_s21 = smov 0  }
   0x3 LB: > { %s764_s22 = sadd.s32 4294967295, %s707_s21   ;;  %s488_s23 = sadd.s32 4294967294, %s707_s21   ;;  %s707_s21 = sphi %s749_s21, %s922_s21   ;;  %s703_s20 = sphi %s747_s20, %s921_s20   ;;  %s699_s19 = sphi %s745_s19, %s920_s19   ;;  %s695_s18 = sphi %s743_s18, %s919_s18  }
   0x4   : > { %s768_s24 = sadd.s32 1, %s707_s21   ;;  %s135_s25 = sadd.s32 1, %s703_s20 }
   0x5   : > { %s132_s26 = ssub.s32 %s707_s21, %s768_s24  ;;  %p145_p0 = scmp.ne.s32.totalorder %s703_s20, %s699_s19 }
   0x6   : > { %p133_p1 = scmp.eq.s32.totalorder %s132_s26, 0  ;;  %p146_p2 = scmp.eq.s32.totalorder %s764_s22, 1 }
   0x7   : > { %p151_p3 = scmp.ne.s32.totalorder %s699_s19, %s695_s18  ;;  %p152_p4 = scmp.eq.s32.totalorder %s488_s23, 1 }
   0x8   : > { %s779_s27 = scalar_select %p133_p1, %s703_s20, %s135_s25  }
   0x9   : > { %p781_p5 = por %p146_p2, %p145_p0  ;;  %p785_p6 = por %p152_p4, %p151_p3 }
   0xa   : > { %p491_p7 = scmp.ge.s32.totalorder %s707_s21, 1  ;;  %p189_p8 = scmp.lt.s32.totalorder %s707_s21, 3 }
   0xc   : > { %p190_p9 = pnand %p491_p7, %p189_p8 }
   0xd   : > { %v221_v0 = vld [vmem:[%s912_s1] sm:$0xff] (!%p190_p9)  ;;  %v222_v1 = vld [vmem:[%s912_s1 + $0x8] sm:$0xff] (!%p190_p9)  ;;  %v223_v2 = vld [vmem:[%s912_s1 + $0x10] sm:$0xff] (!%p190_p9)  ;;  %v709_v3 = vmov (!%p190_p9), 0.0|0.0   ;;  %vm710_vm0 = vmmov (!%p190_p9), 0   ;;  %v711_v6 = vmov (!%p190_p9), 0.0  }
   0xe   : > { %193 = sbr.rel (%p190_p9) target bundleno = 502 (0x1f6), region = 40  ;;  %569 = vmatprep.subr.bf16.mxu0 (!%p190_p9), %v709_v3  ;;  %v570_v4 = vpack.c.bf16 (!%p190_p9), %v222_v1, %v221_v0  ;;  %v224_v5 = vld [vmem:[%s912_s1 + $0x18] sm:$0xff] (!%p190_p9)  ;;  %531 = vmatprep.mubr.msk.f32.mxu0 (!%p190_p9), %vm710_vm0, %v711_v6  ;;  %p216_p10 = scmp.lt.s32.totalorder (!%p190_p9), %s764_s22, 1  ;;  %v307_v7 = vld [vmem:[%s914_s3] sm:$0xff] (!%p190_p9)  ;;  %v308_v8 = vld [vmem:[%s914_s3 + $0x8] sm:$0xff] (!%p190_p9)  ;;  %vm232_vm1 = vcmask (!%p190_p9), 261120  }
   0xf   : > { %575 = vmatprep.subr.bf16.mxu1 (!%p190_p9), %v709_v3  ;;  %v576_v9 = vpack.c.bf16 (!%p190_p9), %v308_v8, %v307_v7  ;;  %v309_v10 = vld [vmem:[%s914_s3 + $0x10] sm:$0xff] (!%p190_p9)  ;;  %v310_v11 = vld [vmem:[%s914_s3 + $0x18] sm:$0xff] (!%p190_p9)  ;;  %566 = vmatprep.mubr.msk.f32.mxu1 (!%p190_p9), %vm710_vm0, %v711_v6  ;;  %v573_v12 = vpack.c.bf16 (!%p190_p9), %v224_v5, %v223_v2  ;;  %v311_v14 = vld [vmem:[%s914_s3 + $0x20] sm:$0xff] (!%p190_p9)  ;;  %s498_s8 = sshll.u32 (!%p190_p9), %s764_s22, 7  ;;  %s712_s15 = smov (!%p190_p9), [#allocation2]  }
  0x10   : > { %571 = vmatpush3.bf16.msra.mxu0 (!%p190_p9), %v570_v4  ;;  %v579_v13 = vpack.c.bf16 (!%p190_p9), %v310_v11, %v309_v10  ;;  %v312_v15 = vld [vmem:[%s914_s3 + $0x28] sm:$0xff] (!%p190_p9)  ;;  %v313_v18 = vld [vmem:[%s914_s3 + $0x30] sm:$0xff] (!%p190_p9)  ;;  %v314_v19 = vld [vmem:[%s914_s3 + $0x38] sm:$0xff] (!%p190_p9)  ;;  %s649_s16 = sshll.u32 (!%p190_p9), %s712_s15, 4  ;;  %s650_s16 = int_to_ptr.vmem [resolvable:$false] %s649_s16 }
  0x11   : > { %572 = vmatprep.subr.bf16.mxu0 (!%p190_p9), %v709_v3  ;;  %577 = vmatpush3.bf16.msra.mxu1 (!%p190_p9), %v576_v9  ;;  %v582_v17 = vpack.c.bf16 (!%p190_p9), %v312_v15, %v311_v14  ;;  %v585_v20 = vpack.c.bf16 (!%p190_p9), %v314_v19, %v313_v18  ;;  %v315_v21 = vld [vmem:[%s914_s3 + $0x40] sm:$0xff] (!%p190_p9)  ;;  %v316_v22 = vld [vmem:[%s914_s3 + $0x48] sm:$0xff] (!%p190_p9)  ;;  %v317_v24 = vld [vmem:[%s914_s3 + $0x50] sm:$0xff] (!%p190_p9)  ;;  %s651_s17 = scalar_lea.vmem (!%p190_p9), %s650_s16, 256 }
  0x12   : > { %578 = vmatprep.subr.bf16.mxu1 (!%p190_p9), %v709_v3  ;;  %v588_v23 = vpack.c.bf16 (!%p190_p9), %v316_v22, %v315_v21  ;;  %v318_v25 = vld [vmem:[%s914_s3 + $0x58] sm:$0xff] (!%p190_p9)  ;;  %v319_v27 = vld [vmem:[%s914_s3 + $0x60] sm:$0xff] (!%p190_p9)  ;;  %v320_v28 = vld [vmem:[%s914_s3 + $0x68] sm:$0xff] (!%p190_p9) }
  0x13   : > { %v591_v26 = vpack.c.bf16 (!%p190_p9), %v318_v25, %v317_v24  ;;  %v594_v29 = vpack.c.bf16 (!%p190_p9), %v320_v28, %v319_v27  ;;  %v321_v30 = vld [vmem:[%s914_s3 + $0x70] sm:$0xff] (!%p190_p9)  ;;  %v322_v31 = vld [vmem:[%s914_s3 + $0x78] sm:$0xff] (!%p190_p9)  ;;  %v494_v33 = vld [vmem:[%s913_s2] ss:$0 sm:$0xff] (!%p190_p9) }
  0x14   : > { %574 = vmatpush3.bf16.msra.mxu0 (!%p190_p9), %v573_v12  ;;  %v597_v32 = vpack.c.bf16 (!%p190_p9), %v322_v31, %v321_v30  ;;  %v496_v38 = vld [vmem:[%s915_s4] ss:$0 sm:$0xff] (!%p190_p9) }
  0x15   : > { %s217_s30 = scalar_select %p216_p10, %s764_s22, 1  ;;  %580 = vmatpush3.bf16.msra.mxu1 %v579_v13 }
  0x16   : > { %581 = vmatprep.subr.bf16.mxu1 %v709_v3 }
  0x17   : > { %s493_s6 = sshll.u32 %s217_s30, 3 }
  0x18   : > { %s219_s13 = scalar_lea.vmem %s911_s0, %s493_s6  ;;  %s213_s6 = sand.u32 1, %s699_s19  }
  0x19   : > { %v220_v16 = vld [vmem:[%s219_s13] sm:$0xff]  ;;  %583 = vmatpush3.bf16.msra.mxu1 %v582_v17  ;;  %s492_s7 = sshll.u32 %s213_s6, 3  ;;  %s868_s13 = scalar_lea.hbm %s916_s5, %s498_s8 }
  0x1a   : > { %532 = vmatmul.mubr.msk.f32.vlgmr.msra.gmra.mrb[0].mxu0 %vm232_vm1, %v220_v16  ;;  %584 = vmatprep.subr.bf16.mxu1 %v709_v3  ;;  %s215_s9 = scalar_lea.vmem [#allocation2], %s492_s7  ;;  %s416_s22 = scalar_lea.sflag [#allocation3], %s213_s6 }
  0x1b   : > { %s429_s10 = sshll.u32 %s215_s9, 4  ;;  %s870_s10 = int_to_ptr.vmem [resolvable:$true] %s429_s10 }
  0x1c   : > { %s645_s14 = scalar_lea.vmem %s870_s10, 128  ;;  %p652_p0 = scmp.lt.s32.totalorder %s870_s10, %s650_s16 }
  0x1d   : > { %586 = vmatpush3.bf16.msra.mxu1 %v585_v20  ;;  %p646_p11 = scmp.ne.s32.totalorder %s870_s10, %s645_s14  ;;  %p653_p1 = scmp.lt.s32.totalorder %s651_s17, %s645_s14 }
  0x1e   : > { %587 = vmatprep.subr.bf16.mxu1 %v709_v3 }
  0x1f   : > { %p647_p12 = pnand %p646_p11, %p781_p5  ;;  %p654_p2 = por %p653_p1, %p652_p0 }
  0x21   : > { %589 = vmatpush3.bf16.msra.mxu1 %v588_v23  ;;  %p648_p13 = pneg %p647_p12 }
  0x22   : > { %590 = vmatprep.subr.bf16.mxu1 %v709_v3 }
  0x23   : > { %p655_p3 = pnand %p654_p2, %p648_p13 }
  0x25   : > { %592 = vmatpush3.bf16.msra.mxu1 %v591_v26 }
  0x26   : > { %593 = vmatprep.subr.bf16.mxu1 %v709_v3 }
  0x29   : > { %595 = vmatpush3.bf16.msra.mxu1 %v594_v29 }
  0x2a   : > { %596 = vmatprep.subr.bf16.mxu1 %v709_v3 }
  0x2d   : > { %598 = vmatpush3.bf16.msra.mxu1 %v597_v32 }
  0xed   : > { %v302_v34 = vpop.f32.mrb[0].mxu0 }
  0xee   : > { %v303_v35 = vadd.f32 %v494_v33, %v302_v34  ;;  %v533_v36 = vpop.f32.mrb[1].mxu0 }
  0xf0   : > { %v306_v37 = vmax.f32 %v303_v35, 0.0 }
  0xf2   : > { %567 = vmatmul.mubr.f32.vlgmr.msra.gmra.mrb[0].mxu1 %v306_v37 }
 0x1c5   : > { %v396_v39 = vpop.f32.mrb[0].mxu1 }
 0x1c6   : > { %v397_v40 = vadd.f32 %v496_v38, %v396_v39  ;;  %v568_v41 = vpop.f32.mrb[1].mxu1 }
 0x1c8   : > { %v400_v42 = vmin.f32 %v397_v40, 20.0  ;;  %vm401_vm3 = vcmp.gt.f32.partialorder %v397_v40, 20.0 }
 0x1ca   : > { %v402_v43 = vmul.f32 1.442695, %v400_v42 }
 0x1cc   : > { %641 = vpow2.f32 %v402_v43 }
 0x1d6   : > { %v642_v44 = vpop.eup %641 }
 0x1d7   : > { %v404_v45 = vadd.f32 1.0, %v642_v44  ;;  %v407_v46 = vmul.f32 -0.5, %v642_v44  ;;  %v410_v48 = vand.u32 2147483647, %v642_v44 }
 0x1d9   : > { %643 = vlog2.f32 %v404_v45  ;;  %v408_v47 = vadd.f32 1.0, %v407_v46  ;;  %vm411_vm2 = vcmp.lt.f32.partialorder %v410_v48, 0.0004427343 }
 0x1db   : > { %v409_v51 = vmul.f32 %v642_v44, %v408_v47 }
 0x1e3   : > { %v644_v49 = vpop.eup %643 }
 0x1e4   : > { %v406_v50 = vmul.f32 0.6931472, %v644_v49 }
 0x1e6   : > { %v412_v52 = vsel %vm411_vm2, %v409_v51, %v406_v50 }
 0x1e7   : > { %v413_v53 = vsel %vm401_vm3, %v397_v40, %v412_v52 }
 0x1e8   : > { %414 = vst.msk [vmem:[%s215_s9] sm:$0xff] %vm232_vm1, %v413_v53 }
 0x1e9   : > { %658 = shalt.err (!%p655_p3)
}
 0x1ea   : > { %s659_s23 = scalar_lea.hbm %s868_s13, 128  ;;  %s663_s30 = scalar_lea.hbm %s916_s5, 256 }
 0x1eb   : > { %p660_p4 = scmp.ne.s32.totalorder %s868_s13, %s659_s23  ;;  %p664_p9 = scmp.lt.u32.totalorder %s868_s13, %s916_s5 }
 0x1ec   : > { %p665_p10 = scmp.lt.u32.totalorder %s663_s30, %s659_s23  ;;  %p667_p12 = scmp.lt.u32.totalorder %s659_s23, %s868_s13 }
 0x1ed   : > { %p661_p7 = pnand %p660_p4, %p781_p5 }
 0x1ee   : > { %p666_p11 = por %p665_p10, %p664_p9 }
 0x1ef   : > { %p662_p8 = pneg %p661_p7 }
 0x1f0   : > { %p668_p13 = por %p667_p12, %p666_p11 }
 0x1f2   : > { %p669_p0 = pnand %p668_p13, %p662_p8 }
 0x1f4   : > { %672 = shalt.err (!%p669_p0)
}
 0x1f5   : > { %599 = dma.vmem_to_hbm [thread:$0]  (%p781_p5), %s870_s10, 128, %s868_s13, %s416_s22  }
 0x1f6 PF: > { %p605_p1 = scmp.ge.s32.totalorder %s707_s21, 2  ;;  %s441_s8 = sand.u32 1, %s695_s18  }
 0x1f7   : > { %s442_s9 = scalar_lea.sflag [#allocation3], %s441_s8 }
 0x1f8   : > { %p602_p2 = pnand %p605_p1, %p785_p6 }
 0x1fa   : > { %690 = dma.done.wait (!%p602_p2), %s442_s9, 128  }
 0x1fb   : > { %692 = vsyncadd (!%p602_p2), %s442_s9, 4294967168  ;;  %p15_p3 = scmp.ge.s32.totalorder %s768_s24, 4   ;;  %s919_s18 = smov %s699_s19 }
 0x1fc   : > { %s920_s19 = smov %s703_s20  ;;  %s921_s20 = smov %s779_s27 }
 0x1fd   : > { %s922_s21 = smov %s768_s24  ;;  %17 = sbr.rel (!%p15_p3) target bundleno = 3 (0x3), region = 75 }
 0x204   :  { %447 = vsyncpa [#allocation3], 1 }
 0x205   :  { %449 = vsyncpa [#allocation3 + $0x1], 1 }

</bundles_post_ra>
